<compile_context>
chip_gen: v7x
topology: tpu7x:2x2x1
jax: 0.10.0
libtpu: 0.0.40
codegen_flags: <defaults>
</compile_context>

<pallas_src>
import functools

import jax
import jax.numpy as jnp
from jax.experimental import pallas as pl
from jax.experimental.pallas import tpu as pltpu


# ----------------------------------------------------------------------------
# Fused kernel: [im2col-matmul conv3x3 + folded BN + ReLU] -> [1x1 conv head].
# One grid step; the intermediate 'features' never leaves VMEM between the
# two "submodules".
# ----------------------------------------------------------------------------
def fused_backbone_head_kernel(p_ref, w1_ref, b1_ref, w2_ref, b2_ref,
                               feat_ref, pred_ref, *, n_batch, hw):
    # p_ref   : (K1, N*HW) bf16  im2col patches, batch folded into lanes
    # w1_ref  : (C1, K1)   bf16  folded conv3x3+BN weight (transposed)
    # b1_ref  : (C1, 1)    f32   folded BN bias
    # w2_ref  : (C2, C1)   bf16  1x1-conv head weight (transposed)
    # b2_ref  : (C2, 1)    f32   head bias
    # feat_ref: (N, C1, HW) bf16 backbone output ('features')
    # pred_ref: (N, C2, HW) f32  head output ('preds')

    # backbone: one MXU matmul over the whole folded batch (f32 accumulate)
    feat = jnp.dot(w1_ref[...], p_ref[...], preferred_element_type=jnp.float32)
    feat = jnp.maximum(feat + b1_ref[...], 0.0)          # folded BN bias + ReLU
    feat_bf16 = feat.astype(jnp.bfloat16)                # cast once, reuse below

    # head: 1x1 conv == (C2,C1) x (C1,N*HW) matmul on the bf16 features in VMEM
    preds = jnp.dot(w2_ref[...], feat_bf16, preferred_element_type=jnp.float32)
    preds = preds + b2_ref[...]

    # Un-fold the batch from the lane axis with static, 128-aligned lane slices
    # (HW = 256 here) so HBM outputs are (N, C, HW) -> NCHW is a free reshape.
    for n in range(n_batch):
        feat_ref[n] = feat_bf16[:, n * hw:(n + 1) * hw]
        pred_ref[n] = preds[:, n * hw:(n + 1) * hw].astype(pred_ref.dtype)


# ----------------------------------------------------------------------------
# Host-side glue: im2col (transposed, batch folded into the lane axis).
# ----------------------------------------------------------------------------
def im2col_3x3_batch_folded(x_nchw):
    """(N,C,H,W) f32 -> (9*C, N*H*W) bf16 patches.

    K index = (dy*3+dx)*C + c, lane index = n*H*W + h*W + w.
    """
    # TODO(synk): at realistic image sizes, skip this HBM im2col (9x read
    #             inflation + XLA pad/slice/concat chain) and build the nine
    #             shifted patch rows inside the kernel from a padded/halo'd
    #             row block instead (shifts land on the XLU slot).
    N, C, H, W = x_nchw.shape
    xp = jnp.pad(x_nchw, ((0, 0), (0, 0), (1, 1), (1, 1)))
    cols = []
    for dy in range(3):
        for dx in range(3):
            cols.append(xp[:, :, dy:dy + H, dx:dx + W].reshape(N, C, H * W))
    p = jnp.concatenate(cols, axis=1)                          # (N, 9C, HW)
    p = jnp.transpose(p, (1, 0, 2)).reshape(9 * C, N * H * W)  # fold batch->lanes
    return p.astype(jnp.bfloat16)


def fused_forward(params, image_nchw):
    N, Cin, H, W = image_nchw.shape
    HW = H * W
    NHW = N * HW
    w1 = params["backbone"]["w_t"]     # (C1, 9*Cin) bf16
    b1 = params["backbone"]["bias"]    # (C1, 1)     f32
    w2 = params["head"]["w_t"]         # (C2, C1)    bf16
    b2 = params["head"]["bias"]        # (C2, 1)     f32
    C1, K1 = w1.shape
    C2 = w2.shape[0]

    patches = im2col_3x3_batch_folded(image_nchw)   # (K1, N*HW) bf16

    kernel = functools.partial(fused_backbone_head_kernel, n_batch=N, hw=HW)

    # TODO(synk): at realistic image sizes, tile H*W across a second "parallel"
    #             grid axis (row blocks with halo), size the tile per chip
    #             (v7x: 64 MiB VMEM vs 128 MiB on v5e/v6e) and set
    #             vmem_limit_bytes explicitly; at this toy size the kernel is
    #             step-overhead bound, so exactly one grid step is optimal.
    feat_t, pred_t = pl.pallas_call(
        kernel,
        out_shape=(jax.ShapeDtypeStruct((N, C1, HW), jnp.bfloat16),
                   jax.ShapeDtypeStruct((N, C2, HW), jnp.float32)),
        grid=(1,),
        in_specs=[
            pl.BlockSpec((K1, NHW), lambda i: (0, 0)),
            pl.BlockSpec((C1, K1), lambda i: (0, 0)),
            pl.BlockSpec((C1, 1), lambda i: (0, 0)),
            pl.BlockSpec((C2, C1), lambda i: (0, 0)),
            pl.BlockSpec((C2, 1), lambda i: (0, 0)),
        ],
        out_specs=(
            pl.BlockSpec((N, C1, HW), lambda i: (0, 0, 0)),
            pl.BlockSpec((N, C2, HW), lambda i: (0, 0, 0)),
        ),
        compiler_params=pltpu.CompilerParams(
            dimension_semantics=("arbitrary",)),
    )(patches, w1, b1, w2, b2)

    # (N, C, H*W) -> NCHW is a free, contiguous reshape (no transpose needed).
    features = feat_t.reshape(N, C1, H, W)
    preds = pred_t.reshape(N, C2, H, W)
    return features, preds


# ----------------------------------------------------------------------------
# ModelHelper equivalent: build params for the synthetic cfg, chain submodules
# with the dict-update forward semantics.
# ----------------------------------------------------------------------------
def build_params(key, cin=4, c_backbone=32, c_head=8):
    k1, k2, k3, k4, k5 = jax.random.split(key, 5)
    # backbone: Conv2d(cin, c_backbone, 3, pad=1) + BatchNorm2d(c_backbone) + ReLU
    w_conv = jax.random.normal(k1, (3, 3, cin, c_backbone), jnp.float32) * 0.1
    b_conv = jax.random.normal(k2, (c_backbone,), jnp.float32) * 0.01
    gamma = 1.0 + 0.1 * jax.random.normal(k3, (c_backbone,), jnp.float32)
    beta = 0.1 * jax.random.normal(k4, (c_backbone,), jnp.float32)
    running_mean = jnp.zeros((c_backbone,), jnp.float32)
    running_var = jnp.ones((c_backbone,), jnp.float32)
    eps = 1e-5
    # TODO(synk): ModelHelper.train() puts BN in training mode (batch stats);
    #             we fold running stats instead (eval-mode BN semantics).
    scale = gamma / jnp.sqrt(running_var + eps)
    w_folded = w_conv * scale[None, None, None, :]
    b_folded = (b_conv - running_mean) * scale + beta
    # (3,3,Cin,Cout) -> (Cout, 9*Cin); K index = (dy*3+dx)*Cin + c (matches im2col).
    w1_t = w_folded.reshape(9 * cin, c_backbone).T

    # head: Conv2d(c_backbone, c_head, 1); inplanes wired from backbone
    # (mirrors the 'prev' / get_outplanes() mechanism in ModelHelper.__init__).
    w_head = jax.random.normal(k5, (c_backbone, c_head), jnp.float32) * 0.1
    b_head = jnp.zeros((c_head,), jnp.float32)

    # Weights stored bf16 (MXU operand dtype, cast once on host); biases f32.
    return {
        "backbone": {"w_t": w1_t.astype(jnp.bfloat16), "bias": b_folded[:, None]},
        "head": {"w_t": w_head.T.astype(jnp.bfloat16), "bias": b_head[:, None]},
    }


def model_helper_forward(params, input_dict):
    """Mirror of ModelHelper.forward: copy the input dict, chain children
    (backbone -> head) via dict update. Both children execute inside a single
    fused Pallas kernel so 'features' never leaves VMEM between them; the
    returned dict is identical to running them sequentially."""
    input_dict = dict(input_dict)                 # copy.copy(input) semantics
    features, preds = fused_forward(params, input_dict["image"])
    input_dict.update({"features": features})     # backbone submodule output
    input_dict.update({"preds": preds})           # head submodule output
    return input_dict


def reference_forward(params, image_nchw):
    """Pure-JAX NCHW reference (XLA conv). Uses the same bf16-rounded weights
    as the kernel (cast back to f32) so only the bf16 activation path differs."""
    w1_t = params["backbone"]["w_t"].astype(jnp.float32)   # (C1, 9*Cin)
    b1 = params["backbone"]["bias"][:, 0]
    w2_t = params["head"]["w_t"].astype(jnp.float32)       # (C2, C1)
    b2 = params["head"]["bias"][:, 0]
    C1, K1 = w1_t.shape
    Cin = K1 // 9
    w1_hwio = w1_t.T.reshape(3, 3, Cin, C1)
    feat = jax.lax.conv_general_dilated(
        image_nchw, w1_hwio, window_strides=(1, 1), padding="SAME",
        dimension_numbers=("NCHW", "HWIO", "NCHW"))
    feat = jnp.maximum(feat + b1[None, :, None, None], 0.0)
    preds = jnp.einsum("nchw,oc->nohw", feat, w2_t) + b2[None, :, None, None]
    return feat, preds


if __name__ == "__main__":
    key = jax.random.PRNGKey(0)
    k_param, k_img = jax.random.split(key)

    N, C, H, W = 2, 4, 16, 16  # small NCHW image, PyTorch convention
    image = jax.random.normal(k_img, (N, C, H, W), jnp.float32)

    params = build_params(k_param, cin=C, c_backbone=32, c_head=8)
    input_dict = {"image": image}

    out = model_helper_forward(params, input_dict)
    jax.block_until_ready(out["features"])
    jax.block_until_ready(out["preds"])

    assert out["image"].shape == (N, C, H, W)
    assert out["features"].shape == (N, 32, H, W)
    assert out["preds"].shape == (N, 8, H, W)
    assert bool(jnp.all(out["features"] >= 0.0))  # ReLU

    # correctness check vs XLA reference (bf16 patches/activations -> loose tol)
    ref_feat, ref_pred = reference_forward(params, image)
    feat_err = float(jnp.max(jnp.abs(out["features"].astype(jnp.float32) - ref_feat)))
    pred_err = float(jnp.max(jnp.abs(out["preds"] - ref_pred)))
    assert feat_err < 5e-2, feat_err
    assert pred_err < 5e-2, pred_err

    print("KERNEL_OK")
</pallas_src>

<mosaic_0001>
module attributes {stable_mosaic.version = 11 : i64} {
  func.func @fused_backbone_head_kernel(%arg0: i32, %arg1: memref<36x512xbf16, #tpu.memory_space<vmem>>, %arg2: memref<32x36xbf16, #tpu.memory_space<vmem>>, %arg3: memref<32x1xf32, #tpu.memory_space<vmem>>, %arg4: memref<8x32xbf16, #tpu.memory_space<vmem>>, %arg5: memref<8x1xf32, #tpu.memory_space<vmem>>, %arg6: memref<2x32x256xbf16, #tpu.memory_space<vmem>>, %arg7: memref<2x8x256xf32, #tpu.memory_space<vmem>>) attributes {dimension_semantics = [#tpu.dimension_semantics<arbitrary>], iteration_bounds = array<i64: 1>, scalar_prefetch = 0 : i64, scratch_operands = 0 : i64, tpu.core_type = #tpu.core_type<tc>, window_params = [{pipeline_mode = #tpu.pipeline_mode<synchronous>, transform_indices = @transform_0, window_bounds = array<i64: 36, 512>}, {pipeline_mode = #tpu.pipeline_mode<synchronous>, transform_indices = @transform_1, window_bounds = array<i64: 32, 36>}, {pipeline_mode = #tpu.pipeline_mode<synchronous>, transform_indices = @transform_2, window_bounds = array<i64: 32, 1>}, {pipeline_mode = #tpu.pipeline_mode<synchronous>, transform_indices = @transform_3, window_bounds = array<i64: 8, 32>}, {pipeline_mode = #tpu.pipeline_mode<synchronous>, transform_indices = @transform_4, window_bounds = array<i64: 8, 1>}, {pipeline_mode = #tpu.pipeline_mode<synchronous>, transform_indices = @transform_5, window_bounds = array<i64: 2, 32, 256>}, {pipeline_mode = #tpu.pipeline_mode<synchronous>, transform_indices = @transform_6, window_bounds = array<i64: 2, 8, 256>}]} {
    %c0 = arith.constant 0 : index
    %c0_0 = arith.constant 0 : index
    %0 = vector.load %arg2[%c0, %c0_0] : memref<32x36xbf16, #tpu.memory_space<vmem>>, vector<32x36xbf16>
    %c0_1 = arith.constant 0 : index
    %c0_2 = arith.constant 0 : index
    %1 = vector.load %arg1[%c0_1, %c0_2] : memref<36x512xbf16, #tpu.memory_space<vmem>>, vector<36x512xbf16>
    %cst = arith.constant dense<0.000000e+00> : vector<32x512xf32>
    %2 = tpu.matmul %0, %1, %cst {dimension_numbers = #tpu.dot_dimension_numbers<[1], [0], [0], [1], [0, 0, 1, 1], [], []>} : vector<32x36xbf16>, vector<36x512xbf16>, vector<32x512xf32> -> vector<32x512xf32>
    %c0_3 = arith.constant 0 : index
    %c0_4 = arith.constant 0 : index
    %3 = vector.load %arg3[%c0_3, %c0_4] : memref<32x1xf32, #tpu.memory_space<vmem>>, vector<32x1xf32>
    %4 = vector.broadcast %3 : vector<32x1xf32> to vector<32x512xf32>
    %5 = arith.addf %2, %4 : vector<32x512xf32>
    %cst_5 = arith.constant 0.000000e+00 : f32
    %6 = vector.broadcast %cst_5 : f32 to vector<32x512xf32>
    %7 = arith.maximumf %5, %6 : vector<32x512xf32>
    %8 = arith.truncf %7 : vector<32x512xf32> to vector<32x512xbf16>
    %c0_6 = arith.constant 0 : index
    %c0_7 = arith.constant 0 : index
    %9 = vector.load %arg4[%c0_6, %c0_7] : memref<8x32xbf16, #tpu.memory_space<vmem>>, vector<8x32xbf16>
    %cst_8 = arith.constant dense<0.000000e+00> : vector<8x512xf32>
    %10 = tpu.matmul %9, %8, %cst_8 {dimension_numbers = #tpu.dot_dimension_numbers<[1], [0], [0], [1], [0, 0, 1, 1], [], []>} : vector<8x32xbf16>, vector<32x512xbf16>, vector<8x512xf32> -> vector<8x512xf32>
    %c0_9 = arith.constant 0 : index
    %c0_10 = arith.constant 0 : index
    %11 = vector.load %arg5[%c0_9, %c0_10] : memref<8x1xf32, #tpu.memory_space<vmem>>, vector<8x1xf32>
    %12 = vector.broadcast %11 : vector<8x1xf32> to vector<8x512xf32>
    %13 = arith.addf %10, %12 : vector<8x512xf32>
    %14 = vector.extract_strided_slice %8 {offsets = [0, 0], sizes = [32, 256], strides = [1, 1]} : vector<32x512xbf16> to vector<32x256xbf16>
    %c0_11 = arith.constant 0 : index
    %c0_12 = arith.constant 0 : index
    %c0_13 = arith.constant 0 : index
    %15 = vector.load %arg6[%c0_11, %c0_12, %c0_13] : memref<2x32x256xbf16, #tpu.memory_space<vmem>>, vector<1x32x256xbf16>
    %16 = vector.shape_cast %15 : vector<1x32x256xbf16> to vector<32x256xbf16>
    %17 = vector.shape_cast %14 : vector<32x256xbf16> to vector<1x32x256xbf16>
    tpu.vector_store %arg6[%c0_11, %c0_12, %c0_13], %17 {strides = array<i32>} : memref<2x32x256xbf16, #tpu.memory_space<vmem>>, vector<1x32x256xbf16>,
    %18 = vector.extract_strided_slice %13 {offsets = [0, 0], sizes = [8, 256], strides = [1, 1]} : vector<8x512xf32> to vector<8x256xf32>
    %c0_14 = arith.constant 0 : index
    %c0_15 = arith.constant 0 : index
    %c0_16 = arith.constant 0 : index
    %19 = vector.load %arg7[%c0_14, %c0_15, %c0_16] : memref<2x8x256xf32, #tpu.memory_space<vmem>>, vector<1x8x256xf32>
    %20 = vector.shape_cast %19 : vector<1x8x256xf32> to vector<8x256xf32>
    %21 = vector.shape_cast %18 : vector<8x256xf32> to vector<1x8x256xf32>
    tpu.vector_store %arg7[%c0_14, %c0_15, %c0_16], %21 {strides = array<i32>} : memref<2x8x256xf32, #tpu.memory_space<vmem>>, vector<1x8x256xf32>,
    %22 = vector.extract_strided_slice %8 {offsets = [0, 256], sizes = [32, 256], strides = [1, 1]} : vector<32x512xbf16> to vector<32x256xbf16>
    %c1 = arith.constant 1 : index
    %c0_17 = arith.constant 0 : index
    %c0_18 = arith.constant 0 : index
    %23 = vector.load %arg6[%c1, %c0_17, %c0_18] : memref<2x32x256xbf16, #tpu.memory_space<vmem>>, vector<1x32x256xbf16>
    %24 = vector.shape_cast %23 : vector<1x32x256xbf16> to vector<32x256xbf16>
    %25 = vector.shape_cast %22 : vector<32x256xbf16> to vector<1x32x256xbf16>
    tpu.vector_store %arg6[%c1, %c0_17, %c0_18], %25 {strides = array<i32>} : memref<2x32x256xbf16, #tpu.memory_space<vmem>>, vector<1x32x256xbf16>,
    %26 = vector.extract_strided_slice %13 {offsets = [0, 256], sizes = [8, 256], strides = [1, 1]} : vector<8x512xf32> to vector<8x256xf32>
    %c1_19 = arith.constant 1 : index
    %c0_20 = arith.constant 0 : index
    %c0_21 = arith.constant 0 : index
    %27 = vector.load %arg7[%c1_19, %c0_20, %c0_21] : memref<2x8x256xf32, #tpu.memory_space<vmem>>, vector<1x8x256xf32>
    %28 = vector.shape_cast %27 : vector<1x8x256xf32> to vector<8x256xf32>
    %29 = vector.shape_cast %26 : vector<8x256xf32> to vector<1x8x256xf32>
    tpu.vector_store %arg7[%c1_19, %c0_20, %c0_21], %29 {strides = array<i32>} : memref<2x8x256xf32, #tpu.memory_space<vmem>>, vector<1x8x256xf32>,
    return
  }
  func.func @transform_0(%arg0: i32) -> (i32, i32) {
    %c0_i32 = arith.constant 0 : i32
    %c0_i32_0 = arith.constant 0 : i32
    %c0_i32_1 = arith.constant 0 : i32
    return %c0_i32, %c0_i32_0 : i32, i32
  }
  func.func @transform_1(%arg0: i32) -> (i32, i32) {
    %c0_i32 = arith.constant 0 : i32
    %c0_i32_0 = arith.constant 0 : i32
    %c0_i32_1 = arith.constant 0 : i32
    return %c0_i32, %c0_i32_0 : i32, i32
  }
  func.func @transform_2(%arg0: i32) -> (i32, i32) {
    %c0_i32 = arith.constant 0 : i32
    %c0_i32_0 = arith.constant 0 : i32
    %c0_i32_1 = arith.constant 0 : i32
    return %c0_i32, %c0_i32_0 : i32, i32
  }
  func.func @transform_3(%arg0: i32) -> (i32, i32) {
    %c0_i32 = arith.constant 0 : i32
    %c0_i32_0 = arith.constant 0 : i32
    %c0_i32_1 = arith.constant 0 : i32
    return %c0_i32, %c0_i32_0 : i32, i32
  }
  func.func @transform_4(%arg0: i32) -> (i32, i32) {
    %c0_i32 = arith.constant 0 : i32
    %c0_i32_0 = arith.constant 0 : i32
    %c0_i32_1 = arith.constant 0 : i32
    return %c0_i32, %c0_i32_0 : i32, i32
  }
  func.func @transform_5(%arg0: i32) -> (i32, i32, i32) {
    %c0_i32 = arith.constant 0 : i32
    %c0_i32_0 = arith.constant 0 : i32
    %c0_i32_1 = arith.constant 0 : i32
    %c0_i32_2 = arith.constant 0 : i32
    return %c0_i32, %c0_i32_0, %c0_i32_1 : i32, i32, i32
  }
  func.func @transform_6(%arg0: i32) -> (i32, i32, i32) {
    %c0_i32 = arith.constant 0 : i32
    %c0_i32_0 = arith.constant 0 : i32
    %c0_i32_1 = arith.constant 0 : i32
    %c0_i32_2 = arith.constant 0 : i32
    return %c0_i32, %c0_i32_0, %c0_i32_1 : i32, i32, i32
  }
}

</mosaic_0001>

<bundles_post_ra>
// kernel: tpu_custom_call.1
= control target key start
LH: loop header
LB: loop body
LE: loop exit
PB: predicated region body
PF: predicated region fallthrough
CT: control target
= control target key end

     0   :  { %12 = vsyncpa [#allocation3], 0  ;;  %s718_s0 = inlined_call_operand.hbm [shape: bf16[36,512], index: 0, kind: input, shape index: {}]   ;;  %s719_s1 = inlined_call_operand.vmem [shape: bf16[32,36], index: 1, kind: input, shape index: {}]   ;;  %s720_s2 = inlined_call_operand.vmem [shape: f32[32,1], index: 2, kind: input, shape index: {}]   ;;  %s721_s3 = inlined_call_operand.vmem [shape: bf16[8,32], index: 3, kind: input, shape index: {}]   ;;  %s722_s4 = inlined_call_operand.vmem [shape: f32[8,1], index: 4, kind: input, shape index: {}]   ;;  %s723_s5 = inlined_call_operand.hbm [shape: bf16[2,32,256], index: 5, kind: output, shape index: {0}]   ;;  %s724_s6 = inlined_call_operand.hbm [shape: f32[2,8,256], index: 6, kind: output, shape index: {1}]  }
   0x1   :  { %13 = vsyncpa [#allocation4], 0 }
   0x2   :  { %14 = vsyncpa [#allocation7], 0  ;;  %s605_s21 = smov [#allocation2]   ;;  %s533_s25 = scalar_lea.hbm %s718_s0, 1280 }
   0x3   :  { %s20_s22 = sshll.u32 %s605_s21, 4  ;;  %p534_p0 = scmp.ne.s32.totalorder %s718_s0, %s533_s25  ;;  %s21_s22 = int_to_ptr.vmem [resolvable:$true] %s20_s22 }
   0x4   :  { %p537_p1 = scmp.lt.u32.totalorder %s533_s25, %s718_s0 }
   0x6   :  { %p539_p2 = pnand %p537_p1, %p534_p0 }
   0x8   :  { %542 = shalt.err (!%p539_p2)
}
   0x9   :  { %s543_s30 = scalar_lea.vmem %s21_s22, 1280  ;;  %p548_p4 = scmp.lt.s32.totalorder %s21_s22, %s21_s22 }
   0xa   :  { %p544_p3 = scmp.ne.s32.totalorder %s21_s22, %s543_s30  ;;  %p549_p5 = scmp.lt.s32.totalorder %s543_s30, %s543_s30 }
   0xc   :  { %p550_p6 = por %p549_p5, %p548_p4 }
   0xe   :  { %p551_p7 = pnand %p550_p6, %p544_p3 }
  0x10   :  { %554 = shalt.err (!%p551_p7)
}
  0x11   :  { %s606_s7 = smov 256   ;;  %s607_s8 = smov 16  }
  0x12   :  { %26 = dma.hbm_to_vmem [thread:$0]  %s718_s0, 1280, %s21_s22, [#allocation3], %s606_s7, %s606_s7, %s607_s8  }
  0x13   :  { %599 = dma.done.wait [#allocation3], 1280  }
  0x14   :  { %600 = vsyncadd [#allocation3], 4294966016  ;;  %v608_v0 = vmov 0   ;;  %v515_v1 = vld [vmem:[#allocation2 + $0x4] ss:$16 sps:$4 sm:$0xff]   ;;  %vm144_vm0 = vcmask 1041408  }
  0x15   :  { %189 = vmatprep.mubr.bf16.mxu0 %v608_v0  ;;  %242 = vmatprep.mubr.bf16.mxu1 %v608_v0  ;;  %v517_v2 = vld [vmem:[#allocation2 + $0xc] ss:$16 sps:$4 sm:$0xff]   ;;  %v519_v3 = vld [vmem:[#allocation2] ss:$16 sps:$4 sm:$0xff]   ;;  %v520_v4 = vld [vmem:[#allocation2 + $0x8] ss:$16 sps:$4 sm:$0xff]  }
  0x16   :  { %513 = vset.pattern.permute.xlu0 %v608_v0  ;;  %514 = vset.pattern.permute.xlu1 %v608_v0  ;;  %v521_v5 = vld [vmem:[#allocation2 + $0x24] ss:$16 sps:$4 sm:$0xff]   ;;  %v523_v6 = vld [vmem:[#allocation2 + $0x2c] ss:$16 sps:$4 sm:$0xff]   ;;  %v525_v7 = vld [vmem:[#allocation2 + $0x20] ss:$16 sps:$4 sm:$0xff]  }
  0x17   :  { %157 = vmatprep.subr.bf16.mxu0 %v515_v1  ;;  %210 = vmatprep.subr.bf16.mxu1 %v517_v2  ;;  %v526_v8 = vld [vmem:[#allocation2 + $0x28] ss:$16 sps:$4 sm:$0xff]   ;;  %v51_v9 = vld [vmem:[#allocation2 + $0x40] sm:$0x33]  ;;  %v55_v18 = vld [vmem:[%s720_s2 + $0x10] sm:$0xff]  ;;  %vm137_vm1 = vcmask 293888  }
  0x18   :  { %158 = vmatpush1.bf16.msra.mxu0 %v519_v3  ;;  %211 = vmatpush1.bf16.msra.mxu1 %v520_v4  ;;  %v52_v10 = vld [vmem:[#allocation2 + $0x48] sm:$0x33]  ;;  %v478_v11 = vcombine.high %v51_v9, %v51_v9  ;;  %v477_v13 = vcombine.low %v51_v9, %v51_v9  ;;  %v53_v15 = vld [vmem:[%s720_s2] sm:$0xff]  ;;  %v56_v21 = vld [vmem:[%s720_s2 + $0x18] sm:$0xff]  ;;  %vm294_vm2 = vcmask 261120  }
  0x19   :  { %159 = vmatprep.subr.bf16.mxu0 %v521_v5  ;;  %212 = vmatprep.subr.bf16.mxu1 %v523_v6  ;;  %v480_v12 = vcombine.high %v52_v10, %v52_v10  ;;  %v479_v14 = vcombine.low %v52_v10, %v52_v10  ;;  %v531_v19 = vld [vmem:[%s719_s1] sm:$0xff]   ;;  %v54_v20 = vld [vmem:[%s720_s2 + $0x8] sm:$0xff] }
  0x1a   :  { %v146_v16 = vsel %vm144_vm0, %v477_v13, 0  ;;  %59 = vperm.xlu0 %513, %v53_v15   ;;  %69 = vperm.xlu1 %514, %v55_v18   ;;  %v288_v22 = vld [vmem:[%s722_s4] sm:$0xff]  ;;  %v532_v23 = vld [vmem:[%s719_s1 + $0x8] sm:$0xff]   ;;  %s609_s4 = smov [#allocation5]  }
  0x1b   :  { %v152_v17 = vsel %vm144_vm0, %v479_v14, 0  ;;  %s439_s24 = sshll.u32 %s609_s4, 4  ;;  %s440_s24 = int_to_ptr.vmem [resolvable:$true] %s439_s24 }
  0x1c   :  { %160 = vmatpush1.bf16.msra.mxu0 %v525_v7  ;;  %213 = vmatpush1.bf16.msra.mxu1 %v526_v8  ;;  %s555_s25 = scalar_lea.vmem %s440_s24, 1024  ;;  %p560_p9 = scmp.lt.s32.totalorder %s440_s24, %s440_s24 }
  0x1d   :  { %481 = vmatprep.subr.msk.bf16.mxu0 %vm144_vm0, %v478_v11  ;;  %484 = vmatprep.subr.msk.bf16.mxu1 %vm144_vm0, %v480_v12  ;;  %p556_p8 = scmp.ne.s32.totalorder %s440_s24, %s555_s25  ;;  %p561_p10 = scmp.lt.s32.totalorder %s555_s25, %s555_s25 }
  0x1e   :  { %64 = vperm.xlu0 %513, %v54_v20   ;;  %74 = vperm.xlu1 %514, %v56_v21  }
  0x1f   :  { %p562_p11 = por %p561_p10, %p560_p9 }
  0x20   :  { %162 = vmatpush1.bf16.msra.mxu0 %v146_v16  ;;  %215 = vmatpush1.bf16.msra.mxu1 %v152_v17 }
  0x21   :  { %p563_p12 = pnand %p562_p11, %p556_p8 }
  0x22   :  { %291 = vperm.xlu0 %513, %v288_v22  }
  0x23   :  { %482 = vmatmul.mubr.msk.bf16.vlgmr.msra.gmra.mrb[0].mxu0 %vm137_vm1, %v531_v19  ;;  %485 = vmatmul.mubr.msk.bf16.vlgmr.msra.gmra.mrb[0].mxu1 %vm137_vm1, %v531_v19 }
  0x24   :  { %199 = vmatprep.mubr.bf16.mxu0 %v608_v0  ;;  %252 = vmatprep.mubr.bf16.mxu1 %v608_v0 }
  0x2b   :  { %483 = vmatmul.mubr.msk.bf16.gmra.mrb[4].mxu0 %vm137_vm1, %v532_v23  ;;  %486 = vmatmul.mubr.msk.bf16.gmra.mrb[4].mxu1 %vm137_vm1, %v532_v23 }
  0x2c   :  { %330 = vmatprep.mubr.bf16.mxu0 %v608_v0  ;;  %371 = vmatprep.mubr.bf16.mxu1 %v608_v0 }
  0x99   :  { %v60_v24 = vpop.permute.xlu0 %59  ;;  %v70_v26 = vpop.permute.xlu1 %69 }
  0x9d   :  { %v65_v25 = vpop.permute.xlu0 %64  ;;  %v75_v55 = vpop.permute.xlu1 %74 }
  0xf6   :  { %v191_v27 = vpop.f32.mrb[0].mxu0  ;;  %v244_v28 = vpop.f32.mrb[0].mxu1 }
  0xf7   :  { %v192_v29 = vadd.f32 %v191_v27, %v60_v24  ;;  %v245_v30 = vadd.f32 %v244_v28, %v60_v24  ;;  %v193_v31 = vpop.f32.mrb[1].mxu0  ;;  %v246_v32 = vpop.f32.mrb[1].mxu1  ;;  %v287_v28 = vld [vmem:[%s721_s3] sm:$0xf] }
  0xf8   :  { %v194_v33 = vadd.f32 %v193_v31, %v60_v24  ;;  %v247_v34 = vadd.f32 %v246_v32, %v60_v24  ;;  %v195_v35 = vpop.f32.mrb[2].mxu0  ;;  %v248_v36 = vpop.f32.mrb[2].mxu1 }
  0xf9   :  { %v263_v37 = vmax.f32 %v192_v29, 0.0  ;;  %v265_v38 = vmax.f32 %v245_v30, 0.0  ;;  %v196_v39 = vadd.f32 %v195_v35, %v65_v25  ;;  %v249_v40 = vadd.f32 %v248_v36, %v65_v25  ;;  %v197_v41 = vpop.f32.mrb[3].mxu0  ;;  %v250_v42 = vpop.f32.mrb[3].mxu1 }
  0xfa   :  { %v264_v43 = vmax.f32 %v194_v33, 0.0  ;;  %v266_v44 = vmax.f32 %v247_v34, 0.0  ;;  %v198_v45 = vadd.f32 %v197_v41, %v65_v25  ;;  %v251_v46 = vadd.f32 %v250_v42, %v65_v25 }
  0xfb   :  { %v267_v47 = vmax.f32 %v196_v39, 0.0  ;;  %v269_v48 = vmax.f32 %v249_v40, 0.0 }
  0xfc   :  { %v497_v49 = vpack.c.bf16 %v264_v43, %v263_v37  ;;  %v501_v50 = vpack.c.bf16 %v266_v44, %v265_v38  ;;  %v268_v51 = vmax.f32 %v198_v45, 0.0  ;;  %v270_v52 = vmax.f32 %v251_v46, 0.0 }
  0xfd   :  { %v279_v53 = vpack.c.bf16 %v267_v47, %v263_v37  ;;  %v281_v54 = vpack.c.bf16 %v269_v48, %v265_v38 }
  0xfe   :  { %400 = vst [vmem:[#allocation5] sm:$0xff] %v497_v49  ;;  %427 = vst [vmem:[#allocation5 + $0x20] sm:$0xff] %v501_v50  ;;  %v280_v56 = vpack.c.bf16 %v268_v51, %v264_v43  ;;  %v498_v57 = vpack.c.bf16 %v268_v51, %v267_v47  ;;  %v282_v58 = vpack.c.bf16 %v270_v52, %v266_v44  ;;  %v201_v60 = vpop.f32.mrb[4].mxu0  ;;  %v254_v61 = vpop.f32.mrb[4].mxu1 }
  0xff   :  { %v502_v59 = vpack.c.bf16 %v270_v52, %v269_v48  ;;  %v202_v62 = vadd.f32 %v201_v60, %v70_v26  ;;  %v255_v63 = vadd.f32 %v254_v61, %v70_v26  ;;  %v203_v0 = vpop.f32.mrb[5].mxu0  ;;  %v256_v1 = vpop.f32.mrb[5].mxu1 }
 0x100   :  { %401 = vst [vmem:[#allocation5 + $0x8] sm:$0xff] %v498_v57  ;;  %v204_v2 = vadd.f32 %v203_v0, %v70_v26  ;;  %v257_v3 = vadd.f32 %v256_v1, %v70_v26  ;;  %v205_v4 = vpop.f32.mrb[6].mxu0  ;;  %v258_v5 = vpop.f32.mrb[6].mxu1  ;;  %298 = vmatprep.subr.bf16.mxu0 %v280_v56  ;;  %339 = vmatprep.subr.bf16.mxu1 %v282_v58 }
 0x101   :  { %428 = vst [vmem:[#allocation5 + $0x28] sm:$0xff] %v502_v59  ;;  %v271_v6 = vmax.f32 %v202_v62, 0.0  ;;  %v273_v7 = vmax.f32 %v255_v63, 0.0  ;;  %v206_v8 = vadd.f32 %v205_v4, %v75_v55  ;;  %v259_v9 = vadd.f32 %v258_v5, %v75_v55  ;;  %v207_v10 = vpop.f32.mrb[7].mxu0  ;;  %v260_v11 = vpop.f32.mrb[7].mxu1  ;;  %299 = vmatpush1.bf16.msra.mxu0 %v279_v53  ;;  %340 = vmatpush1.bf16.msra.mxu1 %v281_v54 }
 0x102   :  { %v272_v12 = vmax.f32 %v204_v2, 0.0  ;;  %v274_v13 = vmax.f32 %v257_v3, 0.0  ;;  %v208_v14 = vadd.f32 %v207_v10, %v75_v55  ;;  %v261_v15 = vadd.f32 %v260_v11, %v75_v55 }
 0x103   :  { %v275_v16 = vmax.f32 %v206_v8, 0.0  ;;  %v277_v17 = vmax.f32 %v259_v9, 0.0 }
 0x104   :  { %v499_v18 = vpack.c.bf16 %v272_v12, %v271_v6  ;;  %v503_v19 = vpack.c.bf16 %v274_v13, %v273_v7  ;;  %v276_v20 = vmax.f32 %v208_v14, 0.0  ;;  %v278_v21 = vmax.f32 %v261_v15, 0.0 }
 0x105   :  { %v283_v22 = vpack.c.bf16 %v275_v16, %v271_v6  ;;  %v285_v23 = vpack.c.bf16 %v277_v17, %v273_v7 }
 0x106   :  { %402 = vst [vmem:[#allocation5 + $0x10] sm:$0xff] %v499_v18  ;;  %429 = vst [vmem:[#allocation5 + $0x30] sm:$0xff] %v503_v19  ;;  %v284_v24 = vpack.c.bf16 %v276_v20, %v272_v12  ;;  %v500_v25 = vpack.c.bf16 %v276_v20, %v275_v16  ;;  %v286_v26 = vpack.c.bf16 %v278_v21, %v274_v13 }
 0x107   :  { %v504_v27 = vpack.c.bf16 %v278_v21, %v277_v17 }
 0x108   :  { %403 = vst [vmem:[#allocation5 + $0x18] sm:$0xff] %v500_v25  ;;  %300 = vmatprep.subr.bf16.mxu0 %v284_v24  ;;  %341 = vmatprep.subr.bf16.mxu1 %v286_v26 }
 0x109   :  { %430 = vst [vmem:[#allocation5 + $0x38] sm:$0xff] %v504_v27  ;;  %301 = vmatpush1.bf16.msra.mxu0 %v283_v22  ;;  %342 = vmatpush1.bf16.msra.mxu1 %v285_v23 }
 0x10c   :  { %487 = vmatmul.mubr.msk.bf16.vlgmr.msra.gmra.mrb[8].mxu0 %vm294_vm2, %v287_v28  ;;  %488 = vmatmul.mubr.msk.bf16.vlgmr.msra.gmra.mrb[8].mxu1 %vm294_vm2, %v287_v28 }
 0x10d   :  { %566 = shalt.err (!%p563_p12)
}
 0x10e   :  { %s567_s28 = scalar_lea.hbm %s723_s5, 1024 }
 0x10f   :  { %p568_p13 = scmp.ne.s32.totalorder %s723_s5, %s567_s28  ;;  %p571_p0 = scmp.lt.u32.totalorder %s567_s28, %s723_s5 }
 0x111   :  { %p573_p1 = pnand %p571_p0, %p568_p13 }
 0x113   :  { %576 = shalt.err (!%p573_p1)
}
 0x114   :  { %s610_s10 = smov 128   ;;  %s611_s0 = smov 8   ;;  %v292_v29 = vpop.permute.xlu0 %291 }
 0x115   :  { %445 = dma.vmem_to_hbm [thread:$0]  %s440_s24, 1024, %s723_s5, [#allocation4], %s610_s10, %s610_s10, %s611_s0  }
 0x116   :  { %s612_s13 = smov [#allocation6]  }
 0x117   :  { %s451_s14 = sshll.u32 %s612_s13, 4  ;;  %s452_s14 = int_to_ptr.vmem [resolvable:$true] %s451_s14 }
 0x118   :  { %s577_s5 = scalar_lea.vmem %s452_s14, 512  ;;  %p582_p3 = scmp.lt.s32.totalorder %s452_s14, %s452_s14 }
 0x119   :  { %p578_p2 = scmp.ne.s32.totalorder %s452_s14, %s577_s5  ;;  %p583_p4 = scmp.lt.s32.totalorder %s577_s5, %s577_s5 }
 0x11b   :  { %p584_p5 = por %p583_p4, %p582_p3 }
 0x11d   :  { %p585_p6 = pnand %p584_p5, %p578_p2 }
 0x1df   :  { %v332_v30 = vpop.f32.mrb[8].mxu0  ;;  %v373_v31 = vpop.f32.mrb[8].mxu1 }
 0x1e0   :  { %v333_v32 = vadd.f32 %v332_v30, %v292_v29  ;;  %v374_v33 = vadd.f32 %v373_v31, %v292_v29  ;;  %v334_v34 = vpop.f32.mrb[9].mxu0  ;;  %v375_v35 = vpop.f32.mrb[9].mxu1 }
 0x1e1   :  { %v335_v36 = vadd.f32 %v334_v34, %v292_v29  ;;  %v376_v37 = vadd.f32 %v375_v35, %v292_v29  ;;  %v336_v38 = vpop.f32.mrb[10].mxu0  ;;  %v377_v39 = vpop.f32.mrb[10].mxu1 }
 0x1e2   :  { %404 = vst [vmem:[#allocation6] sm:$0xff] %v333_v32  ;;  %432 = vst [vmem:[#allocation6 + $0x10] sm:$0xff] %v374_v33  ;;  %v337_v40 = vpop.f32.mrb[11].mxu0  ;;  %v378_v41 = vpop.f32.mrb[11].mxu1 }
 0x1e3   :  { %405 = vst [vmem:[#allocation6 + $0x8] sm:$0xff] %v335_v36  ;;  %433 = vst [vmem:[#allocation6 + $0x18] sm:$0xff] %v376_v37 }
 0x1e4   :  { %588 = shalt.err (!%p585_p6)
}
 0x1e5   :  { %s589_s17 = scalar_lea.hbm %s724_s6, 512 }
 0x1e6   :  { %p590_p7 = scmp.ne.s32.totalorder %s724_s6, %s589_s17  ;;  %p593_p8 = scmp.lt.u32.totalorder %s589_s17, %s724_s6 }
 0x1e8   :  { %p595_p9 = pnand %p593_p8, %p590_p7 }
 0x1ea   :  { %598 = shalt.err (!%p595_p9)
}
 0x1eb   :  { %457 = dma.vmem_to_hbm [thread:$0]  %s452_s14, 512, %s724_s6, [#allocation7], %s606_s7, %s606_s7, %s607_s8  }
 0x1ec   :  { %601 = dma.done.wait [#allocation4], 1024  }
 0x1ed   :  { %602 = vsyncadd [#allocation4], 4294966272 }
 0x1ee   :  { %603 = dma.done.wait [#allocation7], 512  }
 0x1ef   :  { %604 = vsyncadd [#allocation7], 4294966784 }
 0x1f0   :  { %464 = vsyncpa [#allocation3], 1 }
 0x1f1   :  { %465 = vsyncpa [#allocation4], 1 }
 0x1f2   :  { %466 = vsyncpa [#allocation7], 1 }

</bundles_post_ra>
